<compile_context>
chip_gen: v7x
topology: tpu7x:2x2x1
jax: 0.10.0
libtpu: 0.0.40
codegen_flags: <defaults>
</compile_context>

<pallas_src>
import functools

import jax
import jax.numpy as jnp
from jax import lax
from jax.experimental import pallas as pl
from jax.experimental.pallas import tpu as pltpu


_VMEM_LIMIT_BYTES = 32 * 1024 * 1024      # safe scoped limit on v5e/v6e/v7x


def _round_up(n, m):
    return ((n + m - 1) // m) * m


def _pick_lane_tile(hw_pad, c, f, budget_bytes=12 * 1024 * 1024):
    """Largest lane tile (multiple of 128, divides hw_pad) whose double-buffered
    per-step footprint (x in + feats in + out) stays under `budget_bytes`."""
    for t in (2048, 1024, 512, 256, 128):
        if hw_pad % t:
            continue
        est = 2 * 4 * t * (2 * c + f)     # 2 buffers * f32 * (x + out + feats)
        if est <= budget_bytes:
            return t
    return 128


# --------- phase 1: spatial mean pooling (HW-tiled, f32 accumulation) --------

def _pool_kernel(x_ref, o_ref, *, inv_hw):
    # x_ref: (1, C, T) tile of x; o_ref: (1, C, 1) f32 accumulator, resident
    # across the (arbitrary) HW grid axis.
    k = pl.program_id(1)

    @pl.when(k == 0)
    def _():
        o_ref[...] = jnp.zeros_like(o_ref)

    x = x_ref[...].astype(jnp.float32)            # f32 accumulation (v5e/bf16)
    o_ref[...] += jnp.sum(x, axis=-1, keepdims=True)

    @pl.when(k == pl.num_programs(1) - 1)
    def _():
        o_ref[...] = o_ref[...] * inv_hw


# --------- phase 2: batched channel gates (ECA + SE excitation) --------------

def _gates_kernel(p_ref, w1t_ref, w2t_ref, weca_ref, g_ref):
    # p: (B, C) pooled means; w1t: (C, mid); w2t: (mid, C); weca: (1, C)
    # (center tap of the ECA 3x3 conv -- the only tap that sees non-zero data
    # on a 1x1 pooled input).  Output g: (B, C) = sigmoid(SE) + sigmoid(ECA).
    p = p_ref[...]
    h = jnp.maximum(
        jnp.dot(p, w1t_ref[...], preferred_element_type=jnp.float32), 0.0)
    s_se = jnp.dot(h, w2t_ref[...], preferred_element_type=jnp.float32)
    s_eca = jnp.sum(p * weca_ref[...], axis=-1, keepdims=True)        # (B, 1)
    g_ref[...] = jax.nn.sigmoid(s_se) + jax.nn.sigmoid(s_eca)


# --------- phase 3: fused 1x1 conv + sigmoid + triple gating (lane-dense) ----

def _fused_gate_kernel(x_ref, f_ref, wout_ref, g_ref, o_ref):
    # x_ref: (1, C, T); f_ref: (1, F, T) relu'd multi-scale features;
    # wout_ref: (F, 1) 1x1-conv weight (resident); g_ref: (1, C, 1) channel
    # gate (resident per batch); o_ref: (1, C, T).
    x = x_ref[0].astype(jnp.float32)                              # (C, T)
    feats = f_ref[0].astype(jnp.float32)                          # (F, T)
    att = jnp.sum(feats * wout_ref[...], axis=0, keepdims=True)   # (1, T)
    gate = g_ref[0] + jax.nn.sigmoid(att)                         # (C, T)
    o_ref[...] = (x * gate).astype(o_ref.dtype)[None]


# --------- wrapper ------------------------------------------------------------

def _conv2d_same(x, w):
    k = w.shape[-1]
    pad = (k - 1) // 2
    return lax.conv_general_dilated(
        x, w, window_strides=(1, 1), padding=((pad, pad), (pad, pad)),
        dimension_numbers=("NCHW", "OIHW", "NCHW"),
        precision=lax.Precision.HIGHEST)


def semantic_fusion_attention(x, params):
    """x: (B, C, H, W). params: see __main__ for the weight dictionary."""
    B, C, H, W = x.shape
    HW = H * W
    F = params["w_msout"].shape[1]                # 3 * C // 2

    # Multi-scale spatial features (ReLU'd 3x3/5x5/7x7 'SAME' convs).
    # TODO(synk): the spatial convolutions have no clean Pallas equivalent
    # here; they run through XLA while the trailing 1x1 conv, sigmoid and all
    # gating are fused into the Pallas kernels below.
    f1 = jax.nn.relu(_conv2d_same(x, params["w_ms1"]))
    f2 = jax.nn.relu(_conv2d_same(x, params["w_ms2"]))
    f3 = jax.nn.relu(_conv2d_same(x, params["w_ms3"]))
    feats = jnp.concatenate([f1, f2, f3], axis=1)            # (B, F, H, W)

    x2 = x.reshape(B, C, HW)
    feats2 = feats.reshape(B, F, HW)

    # Keep the lane axis 128-dense (pad, then slice back) so the gating kernel
    # issues unmasked full-lane stores.
    HW_pad = _round_up(HW, 128)
    if HW_pad != HW:
        pad = HW_pad - HW
        x2 = jnp.pad(x2, ((0, 0), (0, 0), (0, pad)))
        feats2 = jnp.pad(feats2, ((0, 0), (0, 0), (0, pad)))

    T = _pick_lane_tile(HW_pad, C, F)
    n_hw = HW_pad // T

    # Phase 1: per-(b, c) spatial mean, f32, tiled over HW with a resident
    # accumulator (zero-padded lanes contribute nothing to the sum).
    pooled = pl.pallas_call(
        functools.partial(_pool_kernel, inv_hw=1.0 / HW),
        out_shape=jax.ShapeDtypeStruct((B, C, 1), jnp.float32),
        grid_spec=pltpu.PrefetchScalarGridSpec(
            num_scalar_prefetch=0,
            grid=(B, n_hw),
            in_specs=[pl.BlockSpec((1, C, T), lambda b, k: (b, 0, k))],
            out_specs=pl.BlockSpec((1, C, 1), lambda b, k: (b, 0, 0)),
        ),
        compiler_params=pltpu.CompilerParams(
            dimension_semantics=("parallel", "arbitrary"),
            vmem_limit_bytes=_VMEM_LIMIT_BYTES),
    )(x2)

    # Phase 2: tiny batched excitation -> combined (B, C) channel gate.
    w1t = params["w_fc1"].astype(jnp.float32).T              # (C, mid)
    w2t = params["w_fc2"].astype(jnp.float32).T              # (mid, C)
    kc = params["w_eca"].shape[-1] // 2
    w_eca_row = params["w_eca"][:, :, kc, kc].astype(jnp.float32)   # (1, C)
    gate = pl.pallas_call(
        _gates_kernel,
        out_shape=jax.ShapeDtypeStruct((B, C), jnp.float32),
    )(pooled.reshape(B, C), w1t, w2t, w_eca_row)

    # Phase 3: fused spatial-attention 1x1 conv + sigmoid + gating.  Both grid
    # axes fully parallel (independent tiles) so v7x can shard across cores.
    w_out_col = params["w_msout"].reshape(F, 1).astype(jnp.float32)
    out = pl.pallas_call(
        _fused_gate_kernel,
        out_shape=jax.ShapeDtypeStruct((B, C, HW_pad), x.dtype),
        grid_spec=pltpu.PrefetchScalarGridSpec(
            num_scalar_prefetch=0,
            grid=(B, n_hw),
            in_specs=[
                pl.BlockSpec((1, C, T), lambda b, t: (b, 0, t)),
                pl.BlockSpec((1, F, T), lambda b, t: (b, 0, t)),
                pl.BlockSpec((F, 1), lambda b, t: (0, 0)),        # resident
                pl.BlockSpec((1, C, 1), lambda b, t: (b, 0, 0)),  # resident/b
            ],
            out_specs=pl.BlockSpec((1, C, T), lambda b, t: (b, 0, t)),
        ),
        compiler_params=pltpu.CompilerParams(
            dimension_semantics=("parallel", "parallel"),
            vmem_limit_bytes=_VMEM_LIMIT_BYTES),
    )(x2, feats2, w_out_col, gate.reshape(B, C, 1))

    return out[:, :, :HW].reshape(B, C, H, W)


# --------- pure-JAX reference (matches the PyTorch forward) ------------------

def semantic_fusion_ref(x, params):
    pooled = jnp.mean(x, axis=(2, 3), keepdims=True)          # (B, C, 1, 1)
    # ECAAttention
    eca = _conv2d_same(pooled, params["w_eca"])               # (B, 1, 1, 1)
    out = x * jax.nn.sigmoid(eca)
    # MultiScaleSpatialAttention
    f1 = jax.nn.relu(_conv2d_same(x, params["w_ms1"]))
    f2 = jax.nn.relu(_conv2d_same(x, params["w_ms2"]))
    f3 = jax.nn.relu(_conv2d_same(x, params["w_ms3"]))
    comb = jnp.concatenate([f1, f2, f3], axis=1)
    att = _conv2d_same(comb, params["w_msout"])               # (B, 1, H, W)
    out = out + x * jax.nn.sigmoid(att)
    # SEBlock
    p = pooled[:, :, 0, 0]                                    # (B, C)
    h = jax.nn.relu(jnp.dot(p, params["w_fc1"].T, precision=lax.Precision.HIGHEST))
    s = jax.nn.sigmoid(jnp.dot(h, params["w_fc2"].T, precision=lax.Precision.HIGHEST))
    out = out + x * s[:, :, None, None]
    return out


if __name__ == "__main__":
    B, C, H, W = 2, 32, 16, 16          # C >= 16 so SE reduction=16 gives mid=2
    reduction = 16
    mid = C // reduction                 # 2
    half = C // 2                        # 16
    Fc = 3 * half                        # 48

    key = jax.random.PRNGKey(0)
    ks = jax.random.split(key, 8)
    x = jax.random.normal(ks[0], (B, C, H, W), dtype=jnp.float32)
    params = {
        # ECAAttention.conv: Conv2d(C, 1, k=3, pad=1, bias=False)
        "w_eca": jax.random.normal(ks[1], (1, C, 3, 3), jnp.float32) * 0.1,
        # MultiScaleSpatialAttention convs (bias=False)
        "w_ms1": jax.random.normal(ks[2], (half, C, 3, 3), jnp.float32) * 0.05,
        "w_ms2": jax.random.normal(ks[3], (half, C, 5, 5), jnp.float32) * 0.05,
        "w_ms3": jax.random.normal(ks[4], (half, C, 7, 7), jnp.float32) * 0.05,
        "w_msout": jax.random.normal(ks[5], (1, Fc, 1, 1), jnp.float32) * 0.1,
        # SEBlock fc1/fc2 (1x1 convs, bias=False), squeezed to 2-D (out, in).
        "w_fc1": jax.random.normal(ks[6], (mid, C), jnp.float32) * 0.1,
        "w_fc2": jax.random.normal(ks[7], (C, mid), jnp.float32) * 0.1,
    }

    out = semantic_fusion_attention(x, params)
    out = jax.block_until_ready(out)

    ref = semantic_fusion_ref(x, params)
    assert out.shape == (B, C, H, W)
    assert jnp.allclose(out, ref, atol=1e-4, rtol=1e-4), "mismatch vs reference"
    print("KERNEL_OK")
</pallas_src>

<mosaic_0001>
module attributes {stable_mosaic.version = 11 : i64} {
  func.func @_pool_kernel(%arg0: i32, %arg1: i32, %arg2: memref<1x32x256xf32, #tpu.memory_space<vmem>>, %arg3: memref<1x32x1xf32, #tpu.memory_space<vmem>>) attributes {dimension_semantics = [#tpu.dimension_semantics<parallel>, #tpu.dimension_semantics<arbitrary>], iteration_bounds = array<i64: 2, 1>, scalar_prefetch = 0 : i64, scratch_operands = 0 : i64, tpu.core_type = #tpu.core_type<tc>, window_params = [{transform_indices = @transform_0, window_bounds = array<i64: 1, 32, 256>}, {transform_indices = @transform_1, window_bounds = array<i64: 1, 32, 1>}]} {
    %c0_i32 = arith.constant 0 : i32
    %0 = arith.cmpi eq, %arg1, %c0_i32 : i32
    %1 = arith.extui %0 : i1 to i32
    %c0_i32_0 = arith.constant 0 : i32
    %2 = arith.cmpi ne, %1, %c0_i32_0 : i32
    scf.if %2 {
      %cst_11 = arith.constant 0.000000e+00 : f32
      %12 = vector.broadcast %cst_11 : f32 to vector<1x32x1xf32>
      %c0_12 = arith.constant 0 : index
      %c0_13 = arith.constant 0 : index
      %c0_14 = arith.constant 0 : index
      %13 = vector.load %arg3[%c0_12, %c0_13, %c0_14] : memref<1x32x1xf32, #tpu.memory_space<vmem>>, vector<1x32x1xf32>
      tpu.vector_store %arg3[%c0_12, %c0_13, %c0_14], %12 {strides = array<i32>} : memref<1x32x1xf32, #tpu.memory_space<vmem>>, vector<1x32x1xf32>,
    } else {
    }
    %c0 = arith.constant 0 : index
    %c0_1 = arith.constant 0 : index
    %c0_2 = arith.constant 0 : index
    %3 = vector.load %arg2[%c0, %c0_1, %c0_2] : memref<1x32x256xf32, #tpu.memory_space<vmem>>, vector<1x32x256xf32>
    %c0_3 = arith.constant 0 : index
    %c0_4 = arith.constant 0 : index
    %c0_5 = arith.constant 0 : index
    %4 = vector.load %arg3[%c0_3, %c0_4, %c0_5] : memref<1x32x1xf32, #tpu.memory_space<vmem>>, vector<1x32x1xf32>
    %cst = arith.constant dense<0.000000e+00> : vector<1x32xf32>
    %5 = vector.multi_reduction <add>, %3, %cst [2] : vector<1x32x256xf32> to vector<1x32xf32>
    %6 = vector.shape_cast %5 : vector<1x32xf32> to vector<1x32x1xf32>
    %7 = arith.addf %4, %6 : vector<1x32x1xf32>
    %c0_6 = arith.constant 0 : index
    %c0_7 = arith.constant 0 : index
    %c0_8 = arith.constant 0 : index
    %8 = vector.load %arg3[%c0_6, %c0_7, %c0_8] : memref<1x32x1xf32, #tpu.memory_space<vmem>>, vector<1x32x1xf32>
    tpu.vector_store %arg3[%c0_6, %c0_7, %c0_8], %7 {strides = array<i32>} : memref<1x32x1xf32, #tpu.memory_space<vmem>>, vector<1x32x1xf32>,
    %c0_i32_9 = arith.constant 0 : i32
    %9 = arith.cmpi eq, %arg1, %c0_i32_9 : i32
    %10 = arith.extui %9 : i1 to i32
    %c0_i32_10 = arith.constant 0 : i32
    %11 = arith.cmpi ne, %10, %c0_i32_10 : i32
    scf.if %11 {
      %c0_11 = arith.constant 0 : index
      %c0_12 = arith.constant 0 : index
      %c0_13 = arith.constant 0 : index
      %12 = vector.load %arg3[%c0_11, %c0_12, %c0_13] : memref<1x32x1xf32, #tpu.memory_space<vmem>>, vector<1x32x1xf32>
      %cst_14 = arith.constant 3.906250e-03 : f32
      %13 = vector.broadcast %cst_14 : f32 to vector<1x32x1xf32>
      %14 = arith.mulf %12, %13 : vector<1x32x1xf32>
      %c0_15 = arith.constant 0 : index
      %c0_16 = arith.constant 0 : index
      %c0_17 = arith.constant 0 : index
      %15 = vector.load %arg3[%c0_15, %c0_16, %c0_17] : memref<1x32x1xf32, #tpu.memory_space<vmem>>, vector<1x32x1xf32>
      tpu.vector_store %arg3[%c0_15, %c0_16, %c0_17], %14 {strides = array<i32>} : memref<1x32x1xf32, #tpu.memory_space<vmem>>, vector<1x32x1xf32>,
    } else {
    }
    return
  }
  func.func @transform_0(%arg0: i32, %arg1: i32) -> (i32, i32, i32) {
    %c0_i32 = arith.constant 0 : i32
    %c0_i32_0 = arith.constant 0 : i32
    return %arg0, %c0_i32, %arg1 : i32, i32, i32
  }
  func.func @transform_1(%arg0: i32, %arg1: i32) -> (i32, i32, i32) {
    %c0_i32 = arith.constant 0 : i32
    %c0_i32_0 = arith.constant 0 : i32
    %c0_i32_1 = arith.constant 0 : i32
    return %arg0, %c0_i32, %c0_i32_0 : i32, i32, i32
  }
}

</mosaic_0001>

<bundles_post_ra>
// kernel: tpu_custom_call.1
= control target key start
LH: loop header
LB: loop body
LE: loop exit
PB: predicated region body
PF: predicated region fallthrough
CT: control target
= control target key end

     0   :  { %6 = vsyncpa [#allocation3], 0  ;;  %s616_s0 = inlined_call_operand.hbm [shape: f32[2,32,256], index: 0, kind: input, shape index: {}]   ;;  %s617_s1 = inlined_call_operand.vmem [shape: f32[2,32,1], index: 1, kind: output, shape index: {}]  }
   0x1   :  { %8 = vsyncpa [#allocation3 + $0x1], 0  ;;  %s458_s6 = smov 0   ;;  %s460_s7 = smov 0  }
   0x2   :  { %s462_s8 = smov 0   ;;  %s464_s9 = smov 0  }
   0x3   :  { %s466_s10 = smov 0   ;;  %s468_s11 = smov 0  }
   0x4 LB: > { %s289_s12 = sadd.s32 4294967295, %s442_s11   ;;  %s26_s13 = sadd.s32 1, %s438_s10  ;;  %s442_s11 = sphi %s468_s11, %s14_s11   ;;  %s438_s10 = sphi %s466_s10, %s625_s10   ;;  %s434_s9 = sphi %s464_s9, %s624_s9   ;;  %s430_s8 = sphi %s462_s8, %s623_s8   ;;  %s426_s7 = sphi %s460_s7, %s622_s7   ;;  %s422_s6 = sphi %s458_s6, %s621_s6  }
   0x5   : > { %p28_p0 = scmp.ge.s32.totalorder %s26_s13, 2  ;;  %s35_s14 = sadd.s32 1, %s430_s8 }
   0x6   : > { %p42_p1 = scmp.ne.s32.totalorder %s430_s8, %s426_s7  ;;  %p43_p2 = scmp.eq.s32.totalorder %s442_s11, 0 }
   0x7   : > { %s627_s13 = smov (%p28_p0, %s26_s13), 0  ;;  %p48_p4 = scmp.ne.s32.totalorder %s426_s7, %s422_s6 }
   0x8   : > { %p494_p3 = por %p43_p2, %p42_p1  ;;  %s30_s16 = ssub.s32 %s438_s10, %s627_s13 }
   0x9   : > { %p49_p5 = scmp.eq.s32.totalorder %s289_s12, 0  ;;  %p33_p6 = scmp.eq.s32.totalorder %s30_s16, 0 }
   0xa   : > { %p310_p8 = scmp.lt.s32.totalorder %s442_s11, 2  ;;  %s98_s19 = sand.u32 1, %s430_s8  }
   0xb   : > { %p501_p7 = por %p49_p5, %p48_p4  ;;  %s302_s20 = sshll.u32 %s438_s10, 10 }
   0xc   : > { %s507_s18 = scalar_select %p33_p6, %s430_s8, %s35_s14  }
   0xd   : > { %s293_s21 = sshll.u32 %s98_s19, 6  ;;  %s514_s24 = scalar_lea.hbm %s616_s0, %s302_s20 }
   0xe   : > { %s102_s25 = scalar_lea.vmem [#allocation2], %s293_s21  ;;  %p518_p9 = pnand %p310_p8, %p494_p3 }
   0xf   : > { %s111_s26 = sshll.u32 %s102_s25, 4  ;;  %s524_s28 = scalar_lea.sflag [#allocation3], %s98_s19  ;;  %s522_s26 = int_to_ptr.vmem [resolvable:$true] %s111_s26 }
  0x10   : > { %s362_s29 = scalar_lea.hbm %s514_s24, 1024  ;;  %p364_p11 = pneg %p518_p9 }
  0x11   : > { %p363_p10 = scmp.ne.s32.totalorder %s514_s24, %s362_s29  ;;  %s367_s3 = scalar_lea.hbm %s616_s0, 2048 }
  0x12   : > { %p368_p0 = scmp.lt.u32.totalorder %s514_s24, %s616_s0  ;;  %p369_p1 = scmp.lt.u32.totalorder %s367_s3, %s362_s29 }
  0x13   : > { %p365_p12 = pnand %p364_p11, %p363_p10  ;;  %p371_p3 = scmp.lt.u32.totalorder %s362_s29, %s514_s24 }
  0x14   : > { %p370_p2 = por %p369_p1, %p368_p0 }
  0x15   : > { %p366_p13 = pneg %p365_p12 }
  0x16   : > { %p372_p4 = por %p371_p3, %p370_p2 }
  0x18   : > { %p373_p5 = pnand %p372_p4, %p366_p13 }
  0x1a   : > { %376 = shalt.err (!%p373_p5)
}
  0x1b   : > { %s377_s6 = scalar_lea.vmem %s522_s26, 1024  ;;  %s444_s12 = smov [#allocation2]  }
  0x1c   : > { %p378_p6 = scmp.ne.s32.totalorder %s522_s26, %s377_s6  ;;  %s382_s14 = sshll.u32 %s444_s12, 4  ;;  %s383_s14 = int_to_ptr.vmem [resolvable:$false] %s382_s14 }
  0x1d   : > { %s384_s15 = scalar_lea.vmem %s383_s14, 2048  ;;  %p385_p12 = scmp.lt.s32.totalorder %s522_s26, %s383_s14 }
  0x1e   : > { %p380_p8 = pnand %p378_p6, %p364_p11  ;;  %p386_p0 = scmp.lt.s32.totalorder %s384_s15, %s377_s6 }
  0x20   : > { %p381_p10 = pneg %p380_p8  ;;  %p387_p1 = por %p386_p0, %p385_p12 }
  0x22   : > { %p388_p2 = pnand %p387_p1, %p381_p10 }
  0x24   : > { %391 = shalt.err (!%p388_p2)
}
  0x25   : > { %s445_s16 = smov 256   ;;  %s446_s19 = smov 16  }
  0x26   : > { %309 = dma.hbm_to_vmem [thread:$0]  (!%p518_p9), %s514_s24, 1024, %s522_s26, %s524_s28, %s445_s16, %s445_s16, %s446_s19  }
  0x27   : > { %p296_p11 = scmp.ge.s32.totalorder %s442_s11, 1  ;;  %p119_p13 = scmp.lt.s32.totalorder %s442_s11, 3 }
  0x29   : > { %p120_p3 = pnand %p296_p11, %p119_p13 }
  0x2a   : > { %s125_s20 = sand.u32 (!%p120_p3), 1, %s426_s7  }
  0x2b   : > { %123 = sbr.rel (%p120_p3) target bundleno = 214 (0xd6), region = 24  ;;  %s297_s21 = sshll.u32 (!%p120_p3), %s125_s20, 6 }
  0x2c   : > { %s126_s22 = scalar_lea.sflag (!%p120_p3), [#allocation3], %s125_s20  ;;  %s129_s23 = scalar_lea.vmem (!%p120_p3), [#allocation2], %s297_s21 }
  0x32   : > { %417 = dma.done.wait (%p501_p7), %s126_s22, 1024  }
  0x33   : > { %419 = vsyncadd (%p501_p7), %s126_s22, 4294966272  ;;  %p149_p4 = scmp.lt.s32.totalorder %s434_s9, 1  ;;  %vm158_vm0 = vcmask 7168   ;;  %v447_v0 = vmov 0.0   ;;  %v167_v1 = vld [vmem:[%s129_s23 + $0x20] sm:$0xff]  ;;  %v168_v2 = vld [vmem:[%s129_s23 + $0x28] sm:$0xff] }
  0x34   : > { %v163_v3 = vld [vmem:[%s129_s23] sm:$0xff]  ;;  %v181_v4 = vadd.f32 %v168_v2, %v167_v1  ;;  %v164_v5 = vld [vmem:[%s129_s23 + $0x8] sm:$0xff]  ;;  %v169_v6 = vld [vmem:[%s129_s23 + $0x30] sm:$0xff] }
  0x35   : > { %s629_s9 = smov (!%p149_p4, %s434_s9), 1  ;;  %v170_v7 = vld [vmem:[%s129_s23 + $0x38] sm:$0xff]  ;;  %v175_v8 = vadd.f32 %v164_v5, %v163_v3  ;;  %v165_v9 = vld [vmem:[%s129_s23 + $0x10] sm:$0xff] }
  0x36   : > { %s303_s24 = sshll.u32 %s629_s9, 5  ;;  %v166_v10 = vld [vmem:[%s129_s23 + $0x18] sm:$0xff]  ;;  %182 = vadd.xlane.f32.xlu1 %v181_v4  ;;  %v184_v11 = vadd.f32 %v170_v7, %v169_v6 }
  0x37   : > { %s564_s27 = scalar_lea.vmem %s617_s1, %s303_s24  ;;  %176 = vadd.xlane.f32.xlu0 %v175_v8  ;;  %v178_v12 = vadd.f32 %v166_v10, %v165_v9 }
  0x38   : > { %161 = vst.msk [vmem:[%s564_s27 + $0x10] sm:$0xff] %vm158_vm0, %v447_v0  ;;  %159 = vst.msk [vmem:[%s564_s27] sm:$0xff] %vm158_vm0, %v447_v0 }
  0x39   : > { %160 = vst.msk [vmem:[%s564_s27 + $0x8] sm:$0xff] %vm158_vm0, %v447_v0  ;;  %162 = vst.msk [vmem:[%s564_s27 + $0x18] sm:$0xff] %vm158_vm0, %v447_v0 }
  0x3a   : > { %185 = vadd.xlane.f32.xlu1 %v184_v11 }
  0x3b   : > { %179 = vadd.xlane.f32.xlu0 %v178_v12 }
  0x3f   : > { %v173_v13 = vld [vmem:[%s564_s27 + $0x10] sm:$0xff]  ;;  %v171_v14 = vld [vmem:[%s564_s27] sm:$0xff] }
  0x40   : > { %v174_v19 = vld [vmem:[%s564_s27 + $0x18] sm:$0xff]  ;;  %v172_v20 = vld [vmem:[%s564_s27 + $0x8] sm:$0xff] }
  0xc3   : > { %v183_v15 = vpop.xlane.xlu1 %182 }
  0xc4   : > { %v189_v16 = vadd.f32 %v183_v15, %v173_v13  ;;  %v177_v17 = vpop.xlane.xlu0 %176 }
  0xc5   : > { %v187_v18 = vadd.f32 %v177_v17, %v171_v14 }
  0xc6   : > { %194 = vst.msk [vmem:[%s564_s27 + $0x10] sm:$0xff] %vm158_vm0, %v189_v16 }
  0xc7   : > { %192 = vst.msk [vmem:[%s564_s27] sm:$0xff] %vm158_vm0, %v187_v18  ;;  %v186_v21 = vpop.xlane.xlu1 %185 }
  0xc8   : > { %v190_v22 = vadd.f32 %v186_v21, %v174_v19  ;;  %v180_v23 = vpop.xlane.xlu0 %179 }
  0xc9   : > { %v188_v24 = vadd.f32 %v180_v23, %v172_v20 }
  0xca   : > { %195 = vst.msk [vmem:[%s564_s27 + $0x18] sm:$0xff] %vm158_vm0, %v190_v22 }
  0xcb   : > { %193 = vst.msk [vmem:[%s564_s27 + $0x8] sm:$0xff] %vm158_vm0, %v188_v24 }
  0xcd   : > { %v201_v25 = vld [vmem:[%s564_s27 + $0x10] sm:$0xff] }
  0xce   : > { %v205_v26 = vmul.f32 0.00390625, %v201_v25  ;;  %v199_v27 = vld [vmem:[%s564_s27] sm:$0xff] }
  0xcf   : > { %v203_v28 = vmul.f32 0.00390625, %v199_v27 }
  0xd0   : > { %209 = vst.msk [vmem:[%s564_s27 + $0x10] sm:$0xff] %vm158_vm0, %v205_v26 }
  0xd1   : > { %207 = vst.msk [vmem:[%s564_s27] sm:$0xff] %vm158_vm0, %v203_v28  ;;  %v202_v29 = vld [vmem:[%s564_s27 + $0x18] sm:$0xff] }
  0xd2   : > { %v206_v30 = vmul.f32 0.00390625, %v202_v29  ;;  %v200_v31 = vld [vmem:[%s564_s27 + $0x8] sm:$0xff] }
  0xd3   : > { %v204_v32 = vmul.f32 0.00390625, %v200_v31 }
  0xd4   : > { %210 = vst.msk [vmem:[%s564_s27 + $0x18] sm:$0xff] %vm158_vm0, %v206_v30 }
  0xd5   : > { %208 = vst.msk [vmem:[%s564_s27 + $0x8] sm:$0xff] %vm158_vm0, %v204_v32 }
  0xd6 PF: > { %s14_s11 = sadd.s32 1, %s442_s11   ;;  %s621_s6 = smov %s426_s7 }
  0xd7   : > { %p11_p7 = scmp.ge.s32.totalorder %s14_s11, 4   ;;  %s622_s7 = smov %s430_s8 }
  0xd8   : > { %s623_s8 = smov %s507_s18  ;;  %s624_s9 = smov %s438_s10 }
  0xd9   : > { %s625_s10 = smov %s627_s13  ;;  %13 = sbr.rel (!%p11_p7) target bundleno = 4 (0x4), region = 72 }
  0xe0   :  { %232 = vsyncpa [#allocation3], 1 }
  0xe1   :  { %234 = vsyncpa [#allocation3 + $0x1], 1 }

</bundles_post_ra>
